<compile_context>
chip_gen: v6e
topology: v6e:2x2x1
jax: 0.10.0
libtpu: 0.0.40
codegen_flags: <defaults>
</compile_context>

<pallas_src>
import functools

import jax
import jax.numpy as jnp
from jax.experimental import pallas as pl
from jax.experimental.pallas import tpu as pltpu


# ----------------------------------------------------------------------------
# Kernels
# ----------------------------------------------------------------------------

def _store_halves(out_ref, row_off, rows, s, c, half):
    """Store sin/cos halves for `rows` rows starting at row_off (lane-dense
    two-slab stores when half is 128-aligned, single concat store otherwise)."""
    if half % 128 == 0:
        out_ref[pl.ds(row_off, rows), 0:half] = s.astype(out_ref.dtype)
        out_ref[pl.ds(row_off, rows), half:2 * half] = c.astype(out_ref.dtype)
    else:
        out_ref[pl.ds(row_off, rows), :] = jnp.concatenate(
            [s, c], axis=-1).astype(out_ref.dtype)


def _pos_emb_general_kernel(pos_ref, inv_ref, out_ref):
    """General path: pos_ref (TL,1) f32, inv_ref (1,half) f32, out (TL,2*half)."""
    half = inv_ref.shape[1]
    angle = pos_ref[...] * inv_ref[...]          # outer product: (TL, half)
    _store_halves(out_ref, 0, out_ref.shape[0],
                  jnp.sin(angle), jnp.cos(angle), half)


def _pos_emb_arange_kernel(ss_ref, inv_ref, out_ref, *, seed):
    """Fast path for affine pos_seq: pos[r] = start + step*(tile_base + r).

    ss_ref: SMEM (2,) f32 = [start, step]; inv_ref: (1, half) f32;
    out_ref: (TL, 2*half).  Only the first `seed` rows use polynomial sin/cos;
    subsequent seed-row blocks are rotated by the constant angle
    delta = seed*step*inv_freq (angle-addition identities).
    """
    half = inv_ref.shape[1]
    tl = out_ref.shape[0]
    inv = inv_ref[...]                           # (1, half)
    start = ss_ref[0]
    step = ss_ref[1]
    base = start + step * (pl.program_id(0) * tl).astype(jnp.float32)

    # Seed block (exact sin/cos).
    r = jax.lax.broadcasted_iota(jnp.int32, (seed, half), 0).astype(jnp.float32)
    angle0 = (base + step * r) * inv             # (seed, half)
    s0 = jnp.sin(angle0)
    c0 = jnp.cos(angle0)
    _store_halves(out_ref, 0, seed, s0, c0, half)

    # Constant per-block rotation.
    delta = (step * float(seed)) * inv           # (1, half)
    sd = jnp.sin(delta)
    cd = jnp.cos(delta)

    def body(b, carry):
        s, c = carry
        s2 = s * cd + c * sd
        c2 = c * cd - s * sd
        off = pl.multiple_of(b * seed, seed)
        _store_halves(out_ref, off, seed, s2, c2, half)
        return s2, c2

    jax.lax.fori_loop(1, tl // seed, body, (s0, c0))


# ----------------------------------------------------------------------------
# Tiling / launch helpers
# ----------------------------------------------------------------------------

def _tile_rows(length, demb, out_dtype):
    itemsize = jnp.dtype(out_dtype).itemsize
    sub = 8 if itemsize >= 4 else 16             # sublane pack (f32: 8, bf16: 16)

    # Target ~2 MiB output blocks (per-step overhead ~0.35us; >=512-wide f32
    # tiles reach ~85% of HBM roofline).
    tl = (2 << 20) // max(1, demb * itemsize)
    tl = int(max(256, min(2048, tl)))
    tl = max(sub, (tl // sub) * sub)

    l_ceil = pl.cdiv(length, sub) * sub
    tl = min(tl, l_ceil)
    # Guarantee >=2 grid tiles when the sequence allows it, so the "parallel"
    # grid axis can shard across the two TensorCores on v7x.
    if l_ceil // tl < 2 and l_ceil >= 2 * sub:
        tl = max(sub, ((l_ceil // 2) // sub) * sub)
    l_pad = pl.cdiv(length, tl) * tl
    return tl, l_pad, sub


def _seed_rows(tl, sub):
    for cand in (128, 64, 32, 16, 8):
        if cand % sub == 0 and tl % cand == 0:
            return cand
    return sub


def _vmem_limit(tl, demb, out_dtype):
    itemsize = jnp.dtype(out_dtype).itemsize
    out_tile = tl * demb * itemsize
    in_tiles = tl * 128 * 4 + 8 * max(demb, 256) * 4   # lane/sublane-padded inputs
    # double-buffering + 2x headroom, capped well below v7x's 64 MiB VMEM.
    return int(min(48 << 20, max(8 << 20, 4 * (out_tile + in_tiles))))


def _finish(out, length, demb, bsz):
    if out.shape[0] != length:
        out = out[:length]
    out = out[:, None, :]                        # (L, 1, demb)
    if bsz is not None:
        # torch .expand(-1, bsz, -1): a broadcast view; under jit it normally
        # fuses into the consumer (bsz=None is the documented fast path).
        out = jnp.broadcast_to(out, (length, bsz, demb))
    return out


# ----------------------------------------------------------------------------
# Public wrappers
# ----------------------------------------------------------------------------

@functools.partial(jax.jit, static_argnames=("bsz", "out_dtype"))
def positional_embedding(pos_seq, inv_freq, bsz=None, *, out_dtype=jnp.float32):
    """Exact equivalent of PositionalEmbedding.forward(pos_seq, bsz)."""
    length = pos_seq.shape[0]
    half = inv_freq.shape[0]
    demb = 2 * half
    tl, l_pad, _ = _tile_rows(length, demb, out_dtype)

    pos_2d = pos_seq.astype(jnp.float32)
    if l_pad != length:
        pos_2d = jnp.pad(pos_2d, (0, l_pad - length))
    pos_2d = pos_2d.reshape(l_pad, 1)
    inv_2d = inv_freq.reshape(1, half).astype(jnp.float32)

    out = pl.pallas_call(
        _pos_emb_general_kernel,
        out_shape=jax.ShapeDtypeStruct((l_pad, demb), out_dtype),
        grid_spec=pltpu.PrefetchScalarGridSpec(
            num_scalar_prefetch=0,
            grid=(l_pad // tl,),
            in_specs=[
                pl.BlockSpec((tl, 1), lambda i: (i, 0)),     # pos tile
                pl.BlockSpec((1, half), lambda i: (0, 0)),   # inv_freq resident
            ],
            out_specs=pl.BlockSpec((tl, demb), lambda i: (i, 0)),
        ),
        compiler_params=pltpu.CompilerParams(
            dimension_semantics=("parallel",),
            vmem_limit_bytes=_vmem_limit(tl, demb, out_dtype),
        ),
    )(pos_2d, inv_2d)
    return _finish(out, length, demb, bsz)


@functools.partial(jax.jit, static_argnames=("length", "bsz", "out_dtype"))
def positional_embedding_arange(length, inv_freq, start=None, step=-1.0,
                                bsz=None, *, out_dtype=jnp.float32):
    """Fast path for the usual Transformer-XL case pos_seq = start + step*arange(L).

    No pos_seq tensor is DMA'd: positions are generated in-kernel from the
    [start, step] scalars (SMEM) and sin/cos is produced via an angle-addition
    recurrence.  Default (start=None) reproduces arange(L-1, -1, -1).
    """
    half = inv_freq.shape[0]
    demb = 2 * half
    tl, l_pad, sub = _tile_rows(length, demb, out_dtype)
    seed = _seed_rows(tl, sub)

    if start is None:
        start = float(length - 1)
    ss = jnp.stack([jnp.asarray(start, jnp.float32),
                    jnp.asarray(step, jnp.float32)])          # (2,) -> SMEM
    inv_2d = inv_freq.reshape(1, half).astype(jnp.float32)

    out = pl.pallas_call(
        functools.partial(_pos_emb_arange_kernel, seed=seed),
        out_shape=jax.ShapeDtypeStruct((l_pad, demb), out_dtype),
        grid_spec=pltpu.PrefetchScalarGridSpec(
            num_scalar_prefetch=0,
            grid=(l_pad // tl,),
            in_specs=[
                pl.BlockSpec(memory_space=pltpu.MemorySpace.SMEM),  # [start, step]
                pl.BlockSpec((1, half), lambda i: (0, 0)),          # inv_freq resident
            ],
            out_specs=pl.BlockSpec((tl, demb), lambda i: (i, 0)),
        ),
        compiler_params=pltpu.CompilerParams(
            dimension_semantics=("parallel",),
            vmem_limit_bytes=_vmem_limit(tl, demb, out_dtype),
        ),
    )(ss, inv_2d)
    return _finish(out, length, demb, bsz)


# ----------------------------------------------------------------------------
# Self-test
# ----------------------------------------------------------------------------

if __name__ == "__main__":
    key = jax.random.PRNGKey(0)   # deterministic-input convention

    def ref_pos_emb(pos, inv, bsz=None):
        sinusoid = pos[:, None] * inv[None, :]
        pe = jnp.concatenate([jnp.sin(sinusoid), jnp.cos(sinusoid)], axis=-1)
        pe = pe[:, None, :]
        if bsz is not None:
            pe = jnp.broadcast_to(pe, (pe.shape[0], bsz, pe.shape[-1]))
        return pe

    # --- small case matching the module defaults: demb=32, L=8, bsz=2 ------
    demb, L, bsz = 32, 8, 2
    inv_freq = 1.0 / (10000.0 ** (jnp.arange(0.0, demb, 2.0) / demb))   # (16,)
    pos_seq = jnp.arange(L - 1, -1, -1, dtype=jnp.float32)              # (8,)
    ref = ref_pos_emb(pos_seq, inv_freq, bsz)

    out = jax.block_until_ready(positional_embedding(pos_seq, inv_freq, bsz=bsz))
    assert out.shape == (L, bsz, demb), out.shape
    assert jnp.allclose(out, ref, atol=1e-6), "general path mismatch"

    out_a = jax.block_until_ready(
        positional_embedding_arange(L, inv_freq, start=float(L - 1), step=-1.0,
                                    bsz=bsz))
    assert out_a.shape == (L, bsz, demb), out_a.shape
    assert jnp.allclose(out_a, ref, atol=1e-5), "arange fast path mismatch"

    # --- bsz=None + length not a multiple of the tile -----------------------
    out2 = jax.block_until_ready(positional_embedding(pos_seq[:5], inv_freq))
    assert out2.shape == (5, 1, demb), out2.shape
    assert jnp.allclose(out2, ref_pos_emb(pos_seq[:5], inv_freq), atol=1e-6)

    # --- lane-aligned demb, multi-tile grid, multi-step recurrence ----------
    demb2, L2 = 256, 300
    inv2 = 1.0 / (10000.0 ** (jnp.arange(0.0, demb2, 2.0) / demb2))
    pos2 = jnp.arange(L2 - 1, -1, -1, dtype=jnp.float32)
    ref2 = ref_pos_emb(pos2, inv2)
    outg = jax.block_until_ready(positional_embedding(pos2, inv2))
    assert outg.shape == (L2, 1, demb2)
    assert jnp.allclose(outg, ref2, atol=1e-4), "general path (large) mismatch"
    outa = jax.block_until_ready(
        positional_embedding_arange(L2, inv2, start=float(L2 - 1), step=-1.0))
    assert jnp.allclose(outa, ref2, atol=1e-4), "arange path (large) mismatch"

    # --- bf16 output (store-side narrowing only) -----------------------------
    outb = jax.block_until_ready(
        positional_embedding_arange(64, inv2, start=63.0, step=-1.0,
                                    out_dtype=jnp.bfloat16))
    refb = ref_pos_emb(jnp.arange(63.0, -1.0, -1.0), inv2)
    assert outb.dtype == jnp.bfloat16
    assert jnp.allclose(outb.astype(jnp.float32), refb, atol=1e-2), "bf16 mismatch"

    print("KERNEL_OK")
</pallas_src>

<mosaic_0001>
module attributes {stable_mosaic.version = 11 : i64} {
  func.func @_pos_emb_general_kernel(%arg0: i32, %arg1: memref<8x1xf32, #tpu.memory_space<vmem>>, %arg2: memref<1x16xf32, #tpu.memory_space<vmem>>, %arg3: memref<8x32xf32, #tpu.memory_space<vmem>>) attributes {dimension_semantics = [#tpu.dimension_semantics<parallel>], iteration_bounds = array<i64: 1>, scalar_prefetch = 0 : i64, scratch_operands = 0 : i64, tpu.core_type = #tpu.core_type<tc>, window_params = [{transform_indices = @transform_0, window_bounds = array<i64: 8, 1>}, {pipeline_mode = #tpu.pipeline_mode<synchronous>, transform_indices = @transform_1, window_bounds = array<i64: 1, 16>}, {transform_indices = @transform_2, window_bounds = array<i64: 8, 32>}]} {
    %c0 = arith.constant 0 : index
    %c0_0 = arith.constant 0 : index
    %0 = vector.load %arg1[%c0, %c0_0] : memref<8x1xf32, #tpu.memory_space<vmem>>, vector<8x1xf32>
    %c0_1 = arith.constant 0 : index
    %c0_2 = arith.constant 0 : index
    %1 = vector.load %arg2[%c0_1, %c0_2] : memref<1x16xf32, #tpu.memory_space<vmem>>, vector<1x16xf32>
    %2 = vector.broadcast %0 : vector<8x1xf32> to vector<8x16xf32>
    %3 = vector.broadcast %1 : vector<1x16xf32> to vector<8x16xf32>
    %4 = arith.mulf %2, %3 : vector<8x16xf32>
    %5 = math.sin %4 : vector<8x16xf32>
    %6 = math.cos %4 : vector<8x16xf32>
    %7 = tpu.concatenate %5, %6 in 1 : vector<8x16xf32>, vector<8x16xf32> -> vector<8x32xf32>
    %c0_3 = arith.constant 0 : index
    %c0_4 = arith.constant 0 : index
    %8 = vector.load %arg3[%c0_3, %c0_4] : memref<8x32xf32, #tpu.memory_space<vmem>>, vector<8x32xf32>
    tpu.vector_store %arg3[%c0_3, %c0_4], %7 {strides = array<i32>} : memref<8x32xf32, #tpu.memory_space<vmem>>, vector<8x32xf32>,
    return
  }
  func.func @transform_0(%arg0: i32) -> (i32, i32) {
    %c0_i32 = arith.constant 0 : i32
    %c0_i32_0 = arith.constant 0 : i32
    return %arg0, %c0_i32 : i32, i32
  }
  func.func @transform_1(%arg0: i32) -> (i32, i32) {
    %c0_i32 = arith.constant 0 : i32
    %c0_i32_0 = arith.constant 0 : i32
    %c0_i32_1 = arith.constant 0 : i32
    return %c0_i32, %c0_i32_0 : i32, i32
  }
  func.func @transform_2(%arg0: i32) -> (i32, i32) {
    %c0_i32 = arith.constant 0 : i32
    %c0_i32_0 = arith.constant 0 : i32
    return %arg0, %c0_i32 : i32, i32
  }
}

</mosaic_0001>

<bundles_post_ra>
// kernel: positional_embedding.1
= control target key start
LH: loop header
LB: loop body
LE: loop exit
PB: predicated region body
PF: predicated region fallthrough
CT: control target
= control target key end

     0   :  { %v270_v0 = vmov 0   ;;  %v271_v15 = vmov 683565275   ;;  %v272_v17 = vmov 2475754826   ;;  %s323_s0 = inlined_call_operand.vmem [shape: f32[8,1], index: 0, kind: input, shape index: {}]   ;;  %s324_s1 = inlined_call_operand.vmem [shape: f32[1,16], index: 1, kind: input, shape index: {}]   ;;  %s325_s2 = inlined_call_operand.vmem [shape: f32[8,32], index: 2, kind: output, shape index: {}]  }
   0x1   :  { %265 = vset.pattern.permute.xlu0 %v270_v0  ;;  %v11_v1 = vld [vmem:[%s323_s0] sm:$0xff]  ;;  %v273_v20 = vmov 2131351028   ;;  %v274_v23 = vmov 2102212464   ;;  %s277_s0 = smov 16  }
   0x2   :  { %15 = vperm.xlu0 %265, %v11_v1   ;;  %v244_v2 = vld [vmem:[%s324_s1] ss:$0 sm:$0xff]  ;;  %v275_v26 = vmov 920167782   ;;  %v276_v29 = vmov 1326507024  }
  0x7d   :  { %v16_v3 = vpop.permute.xlu0 %15 }
  0x7e   :  { %v299_v4 = vmul.f32 %v244_v2, %v16_v3 }
  0x80   :  { %v28_v5 = vand.u32 2139095040, %v299_v4  ;;  %v25_v9 = vand.u32 2147483647, %v299_v4  ;;  %vm27_vm7 = vcmp.lt.s32.totalorder %v299_v4, 0  ;;  %vm117_vm15 = vweird.f32 %v299_v4 }
  0x82   :  { %v29_v6 = vshrl.u32 %v28_v5, 23  ;;  %v32_v12 = vand.u32 8388607, %v25_v9  ;;  %vm26_vm8 = vcmp.le.f32.partialorder %v25_v9, 0.7853982 }
  0x84   :  { %v245_v7 = vadd.s32 4294967169, %v29_v6  ;;  %v33_v31 = vor.u32 8388608, %v32_v12 }
  0x86   :  { %v35_v8 = vadd.s32 1, %v245_v7  ;;  %v73_v45 = vshll.u32 %v33_v31, 8 }
  0x88   :  { %vm36_vm0 = vcmp.gt.s32.totalorder %v35_v8, 0 }
  0x89   :  { %v37_v10 = vsel %vm36_vm0, %v35_v8, 0  ;;  %vm236_vm0 = vcmask 130048  }
  0x8a   :  { %v39_v11 = vand.u32 31, %v37_v10  ;;  %v38_v14 = vshrl.u32 %v37_v10, 5 }
  0x8c   :  { %v40_v13 = vsub.s32 32, %v39_v11  ;;  %v42_v16 = vshll.u32 %v271_v15, %v39_v11  ;;  %v45_v18 = vshll.u32 %v272_v17, %v39_v11  ;;  %v48_v22 = vshll.u32 %v273_v20, %v39_v11 }
  0x8d   :  { %v51_v25 = vshll.u32 %v274_v23, %v39_v11  ;;  %v54_v28 = vshll.u32 %v275_v26, %v39_v11  ;;  %vm57_vm1 = vcmp.lt.s32.totalorder %v38_v14, 1  ;;  %vm60_vm2 = vcmp.lt.s32.totalorder %v38_v14, 4 }
  0x8e   :  { %v43_v19 = vshrl.u32 %v272_v17, %v40_v13  ;;  %v46_v21 = vshrl.u32 %v273_v20, %v40_v13  ;;  %v49_v24 = vshrl.u32 %v274_v23, %v40_v13  ;;  %v52_v27 = vshrl.u32 %v275_v26, %v40_v13 }
  0x8f   :  { %v55_v30 = vshrl.u32 %v276_v29, %v40_v13  ;;  %v41_v40 = vshrl.u32 %v271_v15, %v40_v13  ;;  %vm59_vm3 = vcmp.lt.s32.totalorder %v38_v14, 3  ;;  %vm58_vm4 = vcmp.lt.s32.totalorder %v38_v14, 2 }
  0x90   :  { %v44_v32 = vor.u32 %v43_v19, %v42_v16  ;;  %v47_v33 = vor.u32 %v46_v21, %v45_v18  ;;  %v50_v34 = vor.u32 %v49_v24, %v48_v22  ;;  %v53_v35 = vor.u32 %v52_v27, %v51_v25 }
  0x91   :  { %v56_v36 = vor.u32 %v55_v30, %v54_v28 }
  0x92   :  { %v62_v37 = vsel %vm60_vm2, %v50_v34, 2102212464  ;;  %v65_v38 = vsel %vm57_vm1, %v44_v32, %v47_v33  ;;  %v69_v39 = vsel %vm57_vm1, %v47_v33, %v50_v34  ;;  %v66_v41 = vsel %vm60_vm2, %v53_v35, 920167782 }
  0x93   :  { %v70_v42 = vsel %vm60_vm2, %v56_v36, 1326507024  ;;  %v67_v43 = vsel %vm59_vm3, %v50_v34, %v66_v41  ;;  %v61_v46 = vsel %vm57_vm1, %v41_v40, %v44_v32  ;;  %v63_v47 = vsel %vm59_vm3, %v47_v33, %v62_v37 }
  0x94   :  { %v71_v44 = vsel %vm59_vm3, %v53_v35, %v70_v42  ;;  %v68_v48 = vsel %vm58_vm4, %v65_v38, %v67_v43  ;;  %v64_v54 = vsel %vm58_vm4, %v61_v46, %v63_v47  ;;  %vm238_vm1 = vcmask 261120  }
  0x95   :  { %v72_v49 = vsel %vm58_vm4, %v69_v39, %v71_v44  ;;  %v308_v52 = vmul.u32.u64.low %v73_v45, %v68_v48  ;;  %v309_v53 = vmul.u32.u64.high %v73_v45, %v68_v48, %v308_v52  ;;  %v80_v56 = vmul.u32 %v73_v45, %v64_v54 }
  0x96   :  { %v305_v50 = vmul.u32.u64.low %v73_v45, %v72_v49  ;;  %v306_v51 = vmul.u32.u64.high %v73_v45, %v72_v49, %v305_v50 }
  0x97   :  { %v83_v55 = vadd.s32 1, %v309_v53 }
  0x98   :  { %vm82_vm5 = vc.u32 %v306_v51, %v308_v52  ;;  %v81_v5 = vadd.s32 %v308_v52, %v306_v51 }
  0x99   :  { %v84_v57 = vsel %vm82_vm5, %v83_v55, %v309_v53 }
  0x9a   :  { %v85_v58 = vadd.s32 %v84_v57, %v80_v56 }
  0x9c   :  { %v86_v59 = vadd.s32 536870912, %v85_v58 }
  0x9e   :  { %v87_v60 = vshrl.u32 %v86_v59, 30 }
  0xa0   :  { %v88_v61 = vshll.u32 %v87_v60, 30  ;;  %v111_v19 = vsub.s32 4, %v87_v60 }
  0xa2   :  { %v89_v62 = vsub.s32 %v85_v58, %v88_v61  ;;  %v112_v22 = vsel %vm27_vm7, %v111_v19, %v87_v60 }
  0xa3   :  { %v114_v23 = vsel %vm26_vm8, 0, %v112_v22 }
  0xa4   :  { %v91_v63 = vsub.s32 0, %v89_v62  ;;  %v118_v24 = vadd.s32 3, %v114_v23  ;;  %v222_v26 = vand.u32 3, %v114_v23 }
  0xa6   :  { %v246_v0 = vmin.u32 %v91_v63, %v89_v62  ;;  %v119_v25 = vand.u32 3, %v118_v24  ;;  %vm227_vm10 = vcmp.eq.s32.totalorder %v222_v26, 2  ;;  %vm224_vm12 = vcmp.eq.s32.totalorder %v222_v26, 0 }
  0xa7   :  { %vm223_vm14 = vcmp.lt.s32.totalorder %v222_v26, 2 }
  0xa8   :  { %v93_v1 = vclz %v246_v0  ;;  %vm124_vm9 = vcmp.eq.s32.totalorder %v119_v25, 2  ;;  %vm121_vm11 = vcmp.eq.s32.totalorder %v119_v25, 0  ;;  %vm120_vm13 = vcmp.lt.s32.totalorder %v119_v25, 2 }
  0xaa   :  { %v247_v2 = vadd.s32 4294967294, %v93_v1 }
  0xac   :  { %vm248_vm6 = vcmp.lt.s32.totalorder %v247_v2, 0 }
  0xad   :  { %v96_v3 = vsel %vm248_vm6, 0, %v247_v2 }
  0xae   :  { %v97_v6 = vsub.s32 32, %v96_v3  ;;  %v101_v7 = vsub.s32 4294967266, %v96_v3  ;;  %v98_v8 = vshll.u32 %v89_v62, %v96_v3 }
  0xb0   :  { %v99_v10 = vshrl.u32 %v81_v5, %v97_v6  ;;  %v102_v11 = vadd.s32 127, %v101_v7 }
  0xb2   :  { %v100_v12 = vor.u32 %v99_v10, %v98_v8  ;;  %v103_v13 = vshll.u32 %v102_v11, 23 }
  0xb4   :  { %v104_v14 = vor.u32 4788187, %v103_v13  ;;  %v107_v16 = vcvt.s32.f32 %v100_v12 }
  0xb6   :  { %v105_v15 = vand.u32 2147483647, %v104_v14 }
  0xb8   :  { %v108_v17 = vmul.f32 %v107_v16, %v105_v15 }
  0xba   :  { %v109_v18 = vxor.u32 2147483648, %v108_v17 }
  0xbc   :  { %v110_v20 = vsel %vm27_vm7, %v109_v18, %v108_v17 }
  0xbd   :  { %v113_v21 = vsel %vm26_vm8, %v299_v4, %v110_v20 }
  0xbe   :  { %266 = vcosq.f32 %v113_v21 }
  0xbf   :  { %268 = vsinq.f32 %v113_v21 }
  0xcb   :  { %v267_v27 = vpop.eup %266 }
  0xcc   :  { %v269_v28 = vpop.eup %268  ;;  %v125_v29 = vxor.u32 2147483648, %v267_v27 }
  0xcd   :  { %v122_v30 = vxor.u32 2147483648, %v269_v28 }
  0xce   :  { %v229_v31 = vsel %vm227_vm10, %v125_v29, %v269_v28  ;;  %v126_v32 = vsel %vm124_vm9, %v125_v29, %v269_v28 }
  0xcf   :  { %v226_v9 = vsel %vm224_vm12, %v267_v27, %v122_v30  ;;  %v123_v33 = vsel %vm121_vm11, %v267_v27, %v122_v30 }
  0xd0   :  { %v230_v34 = vsel %vm223_vm14, %v226_v9, %v229_v31  ;;  %v127_v35 = vsel %vm120_vm13, %v123_v33, %v126_v32 }
  0xd1   :  { %v231_v36 = vsel %vm117_vm15, nan, %v230_v34  ;;  %v128_v37 = vsel %vm117_vm15, nan, %v127_v35 }
  0xd2   :  { %233 = vrot.lane.b32.xlu0 %v231_v36, %s277_s0 }
 0x144   :  { %v234_v38 = vpop.permute.xlu0 %233 }
 0x145   :  { %v237_v39 = vsel %vm236_vm0, %v128_v37, %v234_v38 }
 0x146   :  { %239 = vst.msk [vmem:[%s325_s2] sm:$0xff] %vm238_vm1, %v237_v39 }

</bundles_post_ra>
